<compile_context>
chip_gen: v6e
topology: v6e:2x2x1
jax: 0.10.0
libtpu: 0.0.40
codegen_flags: <defaults>
</compile_context>

<pallas_src>
import functools

import jax
import jax.numpy as jnp
from jax import lax
from jax.experimental import pallas as pl
from jax.experimental.pallas import tpu as pltpu


def _round_up(v, m):
    return (v + m - 1) // m * m


# --------------------------------------------------------------------------
# Kernels: z = (shift + scale * x) * mask  (scale/shift precomputed, f32)
# --------------------------------------------------------------------------

def _actnorm_kernel_mask(x_ref, mask_ref, scale_ref, shift_ref, z_ref):
    x = x_ref[...].astype(jnp.float32)            # (1, C, Tt)
    m = mask_ref[...].astype(jnp.float32)         # (1, 1, Tt)
    z = (shift_ref[...] + scale_ref[...] * x) * m  # implicit (1,C,1) broadcast
    z_ref[...] = z.astype(z_ref.dtype)


def _actnorm_kernel_nomask(x_ref, scale_ref, shift_ref, z_ref):
    x = x_ref[...].astype(jnp.float32)
    z = shift_ref[...] + scale_ref[...] * x
    z_ref[...] = z.astype(z_ref.dtype)


def _actnorm_kernel_lens(lens_ref, x_ref, scale_ref, shift_ref, z_ref,
                         *, t_tile, b_axis, t_axis):
    # Mask built in-kernel from per-batch lengths (scalar-prefetched in SMEM).
    b = pl.program_id(b_axis)
    t = pl.program_id(t_axis)
    x = x_ref[...].astype(jnp.float32)            # (1, C, Tt)
    col = t * t_tile + lax.broadcasted_iota(jnp.int32, (1, 1, t_tile), 2)
    m = (col < lens_ref[b]).astype(jnp.float32)   # (1, 1, Tt)
    z = (shift_ref[...] + scale_ref[...] * x) * m
    z_ref[...] = z.astype(z_ref.dtype)


# --------------------------------------------------------------------------
# Tile selection (generation-aware VMEM budget)
# --------------------------------------------------------------------------

def _select_t_tile(T, C, itemsize, has_mask, t_tile_target):
    t_full = _round_up(T, 128)
    try:
        vmem_cap = int(getattr(pltpu.get_tpu_info(), "vmem_capacity_bytes",
                               64 * 1024 * 1024))
    except Exception:
        vmem_cap = 64 * 1024 * 1024   # conservative (v7x has 64 MiB/TC)
    budget = vmem_cap // 4            # double-buffered working-set target
    # Per T-lane bytes: double-buffered x + z (+ mask) tiles.
    bytes_per_lane = 2 * (2 * C + (1 if has_mask else 0)) * itemsize
    t_budget = max((budget // bytes_per_lane) // 128 * 128, 128)
    if t_tile_target is None:
        t_tile = min(t_full, 2048, t_budget)
        # Keep per-row DMAs >= 512 lanes unless T itself / budget is smaller.
        t_tile = max(t_tile, min(512, t_full, t_budget))
    else:
        t_tile = min(t_full, max(_round_up(int(t_tile_target), 128), 128),
                     t_budget)
    return max(t_tile, 128), vmem_cap


# --------------------------------------------------------------------------
# Wrapper
# --------------------------------------------------------------------------

def actnorm_forward(x, logs, bias, x_mask=None, x_lens=None, reverse=False,
                    t_tile_target=None, buffer_count=None):
    """ActNorm forward.

    x: (B, C, T); logs, bias: (1, C, 1); x_mask: (B, 1, T) or None.
    x_lens: optional (B,) prefix lengths (used instead of x_mask if given).
    Returns (z, logdet): z (B, C, T) in x.dtype, logdet (B,) in float32.
    """
    B, C, T = x.shape
    has_lens = x_lens is not None
    has_mask = (x_mask is not None) and not has_lens
    itemsize = jnp.dtype(x.dtype).itemsize

    # ---- logdet (tiny reduction, f32, in the wrapper) ----
    logs32 = logs.astype(jnp.float32)
    bias32 = bias.astype(jnp.float32)
    logs_sum = jnp.sum(logs32)
    if reverse:
        logs_sum = -logs_sum
    if has_lens:
        x_len = x_lens.astype(jnp.float32)
    elif has_mask:
        x_len = jnp.sum(x_mask.astype(jnp.float32), axis=(1, 2))
    else:
        x_len = jnp.full((B,), float(T), dtype=jnp.float32)
    logdet = logs_sum * x_len

    # ---- precomputed affine params: z = shift + scale * x (then * mask) ----
    if reverse:
        scale = jnp.exp(-logs32)          # (1, C, 1)
        shift = -bias32 * scale
    else:
        scale = jnp.exp(logs32)
        shift = bias32

    # ---- tiling over T: lane-dense multiples of 128, no host-side padding ----
    t_tile, vmem_cap = _select_t_tile(T, C, itemsize, has_mask, t_tile_target)
    num_t = -(-T // t_tile)

    # ---- grid: larger parallel extent first (megacore balance on v7x) ----
    t_major = num_t >= B
    if t_major:
        grid = (num_t, B)
        def tile_map(t, b, *_):
            return (b, 0, t)
        b_axis, t_axis = 1, 0
    else:
        grid = (B, num_t)
        def tile_map(b, t, *_):
            return (b, 0, t)
        b_axis, t_axis = 0, 1

    def param_map(*_):
        return (0, 0, 0)

    pipeline_kw = {}
    if buffer_count is not None and buffer_count != 2:
        pipeline_kw = dict(pipeline_mode=pl.Buffered(int(buffer_count)))

    x_spec = pl.BlockSpec((1, C, t_tile), tile_map, **pipeline_kw)
    z_spec = pl.BlockSpec((1, C, t_tile), tile_map)
    param_spec = pl.BlockSpec((1, C, 1), param_map)

    # ---- VMEM limit: double-buffered tiles + params + headroom ----
    tile_bytes = C * t_tile * itemsize
    mask_tile_bytes = t_tile * itemsize if has_mask else 0
    needed = 2 * (2 * tile_bytes + mask_tile_bytes) + 4 * C * 4
    vmem_limit = int(min(2 * needed + (1 << 20), vmem_cap * 3 // 4))
    vmem_limit = max(vmem_limit, needed + (1 << 20))

    compiler_params = pltpu.CompilerParams(
        dimension_semantics=("parallel", "parallel"),
        vmem_limit_bytes=vmem_limit,
    )

    bytes_accessed = (2 * B * C * T * itemsize
                      + (B * T * itemsize if has_mask else 0)
                      + 2 * C * 4)
    cost = pl.CostEstimate(flops=3 * B * C * T, transcendentals=0,
                           bytes_accessed=bytes_accessed)

    out_shape = jax.ShapeDtypeStruct((B, C, T), x.dtype)

    if has_lens:
        kernel = functools.partial(_actnorm_kernel_lens, t_tile=t_tile,
                                   b_axis=b_axis, t_axis=t_axis)
        grid_spec = pltpu.PrefetchScalarGridSpec(
            num_scalar_prefetch=1,
            grid=grid,
            in_specs=[x_spec, param_spec, param_spec],
            out_specs=z_spec,
        )
        z = pl.pallas_call(
            kernel,
            out_shape=out_shape,
            grid_spec=grid_spec,
            compiler_params=compiler_params,
            cost_estimate=cost,
        )(x_lens.astype(jnp.int32), x, scale, shift)
    elif has_mask:
        mask_spec = pl.BlockSpec((1, 1, t_tile), tile_map, **pipeline_kw)
        z = pl.pallas_call(
            _actnorm_kernel_mask,
            out_shape=out_shape,
            grid=grid,
            in_specs=[x_spec, mask_spec, param_spec, param_spec],
            out_specs=z_spec,
            compiler_params=compiler_params,
            cost_estimate=cost,
        )(x, x_mask, scale, shift)
    else:
        z = pl.pallas_call(
            _actnorm_kernel_nomask,
            out_shape=out_shape,
            grid=grid,
            in_specs=[x_spec, param_spec, param_spec],
            out_specs=z_spec,
            compiler_params=compiler_params,
            cost_estimate=cost,
        )(x, scale, shift)

    return z, logdet


# --------------------------------------------------------------------------
# Pure-JAX reference
# --------------------------------------------------------------------------

def actnorm_reference(x, logs, bias, x_mask=None, reverse=False):
    B, C, T = x.shape
    if x_mask is None:
        x_mask = jnp.ones((B, 1, T), dtype=x.dtype)
    x_len = jnp.sum(x_mask.astype(jnp.float32), axis=(1, 2))
    logs32 = logs.astype(jnp.float32)
    if reverse:
        z = (x - bias) * jnp.exp(-logs) * x_mask
        logdet = jnp.sum(-logs32) * x_len
    else:
        z = (bias + jnp.exp(logs) * x) * x_mask
        logdet = jnp.sum(logs32) * x_len
    return z, logdet


if __name__ == "__main__":
    key = jax.random.PRNGKey(0)
    kx, kl, kb, kx2 = jax.random.split(key, 4)

    # --- small test: B=2, C=4, T=8 (edge block smaller than one 128 lane tile) ---
    B, C, T = 2, 4, 8
    x = jax.random.normal(kx, (B, C, T), dtype=jnp.float32)
    lens = jnp.array([T, T - 3], dtype=jnp.int32)
    x_mask = (jnp.arange(T)[None, None, :] < lens[:, None, None]).astype(jnp.float32)
    logs = 0.1 * jax.random.normal(kl, (1, C, 1), dtype=jnp.float32)
    bias = 0.1 * jax.random.normal(kb, (1, C, 1), dtype=jnp.float32)

    z, logdet = actnorm_forward(x, logs, bias, x_mask=x_mask, reverse=False)
    jax.block_until_ready((z, logdet))
    z_ref, logdet_ref = actnorm_reference(x, logs, bias, x_mask, reverse=False)
    assert jnp.allclose(z, z_ref, atol=1e-5, rtol=1e-5), "z mismatch"
    assert jnp.allclose(logdet, logdet_ref, atol=1e-5, rtol=1e-5), "logdet mismatch"

    # reverse path
    zr, logdet_r = actnorm_forward(z, logs, bias, x_mask=x_mask, reverse=True)
    jax.block_until_ready((zr, logdet_r))
    zr_ref, logdet_r_ref = actnorm_reference(z, logs, bias, x_mask, reverse=True)
    assert jnp.allclose(zr, zr_ref, atol=1e-5, rtol=1e-5), "reverse z mismatch"
    assert jnp.allclose(logdet_r, logdet_r_ref, atol=1e-5, rtol=1e-5), "reverse logdet mismatch"

    # no-mask specialized path
    zn, logdet_n = actnorm_forward(x, logs, bias, None, reverse=False)
    jax.block_until_ready((zn, logdet_n))
    zn_ref, logdet_n_ref = actnorm_reference(x, logs, bias, None, reverse=False)
    assert jnp.allclose(zn, zn_ref, atol=1e-5, rtol=1e-5), "no-mask z mismatch"
    assert jnp.allclose(logdet_n, logdet_n_ref, atol=1e-5, rtol=1e-5), "no-mask logdet mismatch"

    # prefix-length (scalar-prefetch, in-kernel mask) path
    zl, logdet_l = actnorm_forward(x, logs, bias, x_lens=lens, reverse=False)
    jax.block_until_ready((zl, logdet_l))
    assert jnp.allclose(zl, z_ref, atol=1e-5, rtol=1e-5), "lens z mismatch"
    assert jnp.allclose(logdet_l, logdet_ref, atol=1e-5, rtol=1e-5), "lens logdet mismatch"

    # --- multi-tile + non-divisible edge test: grid over T with a partial last tile ---
    B2, C2, T2 = 2, 8, 600
    x2 = jax.random.normal(kx2, (B2, C2, T2), dtype=jnp.float32)
    lens2 = jnp.array([T2, T2 - 57], dtype=jnp.int32)
    mask2 = (jnp.arange(T2)[None, None, :] < lens2[:, None, None]).astype(jnp.float32)
    logs2 = 0.1 * jax.random.normal(kl, (1, C2, 1), dtype=jnp.float32)
    bias2 = 0.1 * jax.random.normal(kb, (1, C2, 1), dtype=jnp.float32)

    z2, logdet2 = actnorm_forward(x2, logs2, bias2, x_mask=mask2, reverse=False,
                                  t_tile_target=256)
    jax.block_until_ready((z2, logdet2))
    z2_ref, logdet2_ref = actnorm_reference(x2, logs2, bias2, mask2, reverse=False)
    assert jnp.allclose(z2, z2_ref, atol=1e-5, rtol=1e-5), "tiled z mismatch"
    assert jnp.allclose(logdet2, logdet2_ref, atol=1e-5, rtol=1e-5), "tiled logdet mismatch"

    z2l, logdet2l = actnorm_forward(x2, logs2, bias2, x_lens=lens2, reverse=False,
                                    t_tile_target=256)
    jax.block_until_ready((z2l, logdet2l))
    assert jnp.allclose(z2l, z2_ref, atol=1e-5, rtol=1e-5), "tiled lens z mismatch"
    assert jnp.allclose(logdet2l, logdet2_ref, atol=1e-5, rtol=1e-5), "tiled lens logdet mismatch"

    print("KERNEL_OK")
</pallas_src>

<mosaic_0001>
module attributes {stable_mosaic.version = 11 : i64} {
  func.func @_actnorm_kernel_mask(%arg0: i32, %arg1: i32, %arg2: memref<1x4x128xf32, #tpu.memory_space<vmem>>, %arg3: memref<1x1x128xf32, #tpu.memory_space<vmem>>, %arg4: memref<1x4x1xf32, #tpu.memory_space<vmem>>, %arg5: memref<1x4x1xf32, #tpu.memory_space<vmem>>, %arg6: memref<1x4x128xf32, #tpu.memory_space<vmem>>) attributes {dimension_semantics = [#tpu.dimension_semantics<parallel>, #tpu.dimension_semantics<parallel>], iteration_bounds = array<i64: 2, 1>, scalar_prefetch = 0 : i64, scratch_operands = 0 : i64, tpu.core_type = #tpu.core_type<tc>, window_params = [{transform_indices = @transform_0, window_bounds = array<i64: 1, 4, 128>}, {transform_indices = @transform_1, window_bounds = array<i64: 1, 1, 128>}, {pipeline_mode = #tpu.pipeline_mode<synchronous>, transform_indices = @transform_2, window_bounds = array<i64: 1, 4, 1>}, {pipeline_mode = #tpu.pipeline_mode<synchronous>, transform_indices = @transform_3, window_bounds = array<i64: 1, 4, 1>}, {transform_indices = @transform_4, window_bounds = array<i64: 1, 4, 128>}]} {
    %c0 = arith.constant 0 : index
    %c0_0 = arith.constant 0 : index
    %c0_1 = arith.constant 0 : index
    %0 = vector.load %arg2[%c0, %c0_0, %c0_1] : memref<1x4x128xf32, #tpu.memory_space<vmem>>, vector<1x4x128xf32>
    %c0_2 = arith.constant 0 : index
    %c0_3 = arith.constant 0 : index
    %c0_4 = arith.constant 0 : index
    %1 = vector.load %arg3[%c0_2, %c0_3, %c0_4] : memref<1x1x128xf32, #tpu.memory_space<vmem>>, vector<1x1x128xf32>
    %c0_5 = arith.constant 0 : index
    %c0_6 = arith.constant 0 : index
    %c0_7 = arith.constant 0 : index
    %2 = vector.load %arg5[%c0_5, %c0_6, %c0_7] : memref<1x4x1xf32, #tpu.memory_space<vmem>>, vector<1x4x1xf32>
    %c0_8 = arith.constant 0 : index
    %c0_9 = arith.constant 0 : index
    %c0_10 = arith.constant 0 : index
    %3 = vector.load %arg4[%c0_8, %c0_9, %c0_10] : memref<1x4x1xf32, #tpu.memory_space<vmem>>, vector<1x4x1xf32>
    %4 = vector.broadcast %3 : vector<1x4x1xf32> to vector<1x4x128xf32>
    %5 = arith.mulf %4, %0 : vector<1x4x128xf32>
    %6 = vector.broadcast %2 : vector<1x4x1xf32> to vector<1x4x128xf32>
    %7 = arith.addf %6, %5 : vector<1x4x128xf32>
    %8 = vector.broadcast %1 : vector<1x1x128xf32> to vector<1x4x128xf32>
    %9 = arith.mulf %7, %8 : vector<1x4x128xf32>
    %c0_11 = arith.constant 0 : index
    %c0_12 = arith.constant 0 : index
    %c0_13 = arith.constant 0 : index
    %10 = vector.load %arg6[%c0_11, %c0_12, %c0_13] : memref<1x4x128xf32, #tpu.memory_space<vmem>>, vector<1x4x128xf32>
    tpu.vector_store %arg6[%c0_11, %c0_12, %c0_13], %9 {strides = array<i32>} : memref<1x4x128xf32, #tpu.memory_space<vmem>>, vector<1x4x128xf32>,
    return
  }
  func.func @transform_0(%arg0: i32, %arg1: i32) -> (i32, i32, i32) {
    %c0_i32 = arith.constant 0 : i32
    %c0_i32_0 = arith.constant 0 : i32
    return %arg0, %c0_i32, %arg1 : i32, i32, i32
  }
  func.func @transform_1(%arg0: i32, %arg1: i32) -> (i32, i32, i32) {
    %c0_i32 = arith.constant 0 : i32
    %c0_i32_0 = arith.constant 0 : i32
    return %arg0, %c0_i32, %arg1 : i32, i32, i32
  }
  func.func @transform_2(%arg0: i32, %arg1: i32) -> (i32, i32, i32) {
    %c0_i32 = arith.constant 0 : i32
    %c0_i32_0 = arith.constant 0 : i32
    %c0_i32_1 = arith.constant 0 : i32
    %c0_i32_2 = arith.constant 0 : i32
    return %c0_i32, %c0_i32_0, %c0_i32_1 : i32, i32, i32
  }
  func.func @transform_3(%arg0: i32, %arg1: i32) -> (i32, i32, i32) {
    %c0_i32 = arith.constant 0 : i32
    %c0_i32_0 = arith.constant 0 : i32
    %c0_i32_1 = arith.constant 0 : i32
    %c0_i32_2 = arith.constant 0 : i32
    return %c0_i32, %c0_i32_0, %c0_i32_1 : i32, i32, i32
  }
  func.func @transform_4(%arg0: i32, %arg1: i32) -> (i32, i32, i32) {
    %c0_i32 = arith.constant 0 : i32
    %c0_i32_0 = arith.constant 0 : i32
    return %arg0, %c0_i32, %arg1 : i32, i32, i32
  }
}

</mosaic_0001>

<bundles_post_ra>
// kernel: tpu_custom_call.1
= control target key start
LH: loop header
LB: loop body
LE: loop exit
PB: predicated region body
PF: predicated region fallthrough
CT: control target
= control target key end

     0   :  { %9 = vsyncpa [#allocation3], 0  ;;  %s647_s0 = inlined_call_operand.vmem [shape: f32[2,4,8], index: 0, kind: input, shape index: {}]   ;;  %s648_s1 = inlined_call_operand.vmem [shape: f32[2,1,8], index: 1, kind: input, shape index: {}]   ;;  %s649_s2 = inlined_call_operand.vmem [shape: f32[1,4,1], index: 2, kind: input, shape index: {}]   ;;  %s650_s3 = inlined_call_operand.vmem [shape: f32[1,4,1], index: 3, kind: input, shape index: {}]   ;;  %s651_s4 = inlined_call_operand.hbm [shape: f32[2,4,8], index: 4, kind: output, shape index: {}]  }
   0x1   :  { %11 = vsyncpa [#allocation3 + $0x1], 0  ;;  %s539_s15 = smov 0   ;;  %s541_s16 = smov 0  }
   0x2   :  { %s543_s17 = smov 0   ;;  %s545_s18 = smov 0  }
   0x3   :  { %s547_s19 = smov 0   ;;  %s549_s20 = smov 0  }
   0x4 LB: > { %s365_s21 = sadd.s32 4294967295, %s510_s20   ;;  %s366_s22 = sadd.s32 4294967294, %s510_s20   ;;  %s510_s20 = sphi %s549_s20, %s17_s20   ;;  %s506_s19 = sphi %s547_s19, %s658_s19   ;;  %s502_s18 = sphi %s545_s18, %s657_s18   ;;  %s498_s17 = sphi %s543_s17, %s656_s17   ;;  %s494_s16 = sphi %s541_s16, %s655_s16   ;;  %s490_s15 = sphi %s539_s15, %s654_s15  }
   0x5   : > { %s29_s23 = sadd.s32 1, %s506_s19  ;;  %s136_s24 = sadd.s32 1, %s498_s17 }
   0x6   : > { %p31_p0 = scmp.ge.s32.totalorder %s29_s23, 2  ;;  %p146_p1 = scmp.ne.s32.totalorder %s498_s17, %s494_s16 }
   0x7   : > { %p147_p2 = scmp.eq.s32.totalorder %s365_s21, 1  ;;  %p152_p3 = scmp.ne.s32.totalorder %s494_s16, %s490_s15 }
   0x8   : > { %s660_s23 = smov (%p31_p0, %s29_s23), 0  ;;  %p153_p5 = scmp.eq.s32.totalorder %s366_s22, 1 }
   0x9   : > { %p579_p4 = por %p147_p2, %p146_p1  ;;  %s131_s26 = ssub.s32 %s506_s19, %s660_s23 }
   0xa   : > { %p369_p6 = scmp.ge.s32.totalorder %s510_s20, 1  ;;  %p134_p7 = scmp.eq.s32.totalorder %s131_s26, 0 }
   0xb   : > { %p586_p8 = por %p153_p5, %p152_p3  ;;  %p196_p9 = scmp.lt.s32.totalorder %s510_s20, 3 }
   0xc   : > { %s592_s28 = scalar_select %p134_p7, %s498_s17, %s136_s24  }
   0xd   : > { %p197_p10 = pnand %p369_p6, %p196_p9 }
   0xe   : > { %p230_p11 = scmp.lt.s32.totalorder (!%p197_p10), %s502_s18, 1  ;;  %s227_s9 = sand.u32 (!%p197_p10), 1, %s494_s16  }
   0xf   : > { %200 = sbr.rel (%p197_p10) target bundleno = 167 (0xa7), region = 36  ;;  %s370_s13 = sshll.u32 (!%p197_p10), %s227_s9, 2 }
  0x10   : > { %s374_s24 = sshll.u32 (!%p197_p10), %s502_s18, 6  ;;  %s229_s26 = scalar_lea.vmem (!%p197_p10), [#allocation2], %s370_s13 }
  0x11   : > { %s282_s29 = sshll.u32 (!%p197_p10), %s229_s26, 4  ;;  %s280_s6 = scalar_lea.hbm (!%p197_p10), %s651_s4, %s374_s24  ;;  %s283_s29 = int_to_ptr.vmem [resolvable:$true] %s282_s29 }
  0x12   : > { %s434_s10 = scalar_lea.vmem (!%p197_p10), %s283_s29, 64 }
  0x13   : > { %p435_p12 = scmp.ne.s32.totalorder (!%p197_p10), %s283_s29, %s434_s10 }
  0x14   : > { %v246_v0 = vld [vmem:[%s649_s2] sm:$0xf]  ;;  %v512_v1 = vmov 0   ;;  %s231_s7 = scalar_select %p230_p11, %s502_s18, 1 }
  0x15   : > { %433 = vset.pattern.permute.xlu0 %v512_v1  ;;  %v245_v2 = vld [vmem:[%s650_s3] sm:$0xf]  ;;  %p436_p13 = pnand %p435_p12, %p579_p4 }
  0x16   : > { %249 = vperm.xlu0 %433, %v246_v0   ;;  %s371_s8 = sshll.u32 %s231_s7, 2  ;;  %s242_s22 = scalar_lea.vmem %s648_s1, %s231_s7 }
  0x17   : > { %s236_s12 = scalar_lea.vmem %s647_s0, %s371_s8  ;;  %v372_v7 = vld [vmem:[%s242_s22] ss:$0 sm:$0xff]  ;;  %s268_s8 = scalar_lea.sflag [#allocation3], %s227_s9 }
  0x18   : > { %v243_v4 = vld [vmem:[%s236_s12] sm:$0xf]  ;;  %p437_p0 = pneg %p436_p13  ;;  %s513_s7 = smov [#allocation2]  }
  0x19   : > { %s438_s11 = sshll.u32 %s513_s7, 4  ;;  %s439_s11 = int_to_ptr.vmem [resolvable:$false] %s438_s11 }
  0x1a   : > { %255 = vperm.xlu0 %433, %v245_v2   ;;  %s440_s18 = scalar_lea.vmem %s439_s11, 128  ;;  %p441_p1 = scmp.lt.s32.totalorder %s283_s29, %s439_s11 }
  0x1b   : > { %p442_p2 = scmp.lt.s32.totalorder %s440_s18, %s434_s10 }
  0x1d   : > { %p443_p3 = por %p442_p2, %p441_p1 }
  0x1f   : > { %p444_p5 = pnand %p443_p3, %p437_p0 }
  0x91   : > { %v250_v3 = vpop.permute.xlu0 %249 }
  0x92   : > { %v252_v5 = vmul.f32 %v250_v3, %v243_v4 }
  0x95   : > { %v256_v6 = vpop.permute.xlu0 %255 }
  0x96   : > { %v258_v8 = vadd.f32 %v256_v6, %v252_v5 }
  0x98   : > { %v265_v9 = vmul.f32 %v372_v7, %v258_v8 }
  0x9a   : > { %266 = vst [vmem:[%s229_s26] sm:$0xf] %v265_v9 }
  0x9b   : > { %447 = shalt.err (!%p444_p5)
}
  0x9c   : > { %s448_s12 = scalar_lea.hbm %s280_s6, 64  ;;  %s452_s14 = scalar_lea.hbm %s651_s4, 128 }
  0x9d   : > { %p449_p6 = scmp.ne.s32.totalorder %s280_s6, %s448_s12  ;;  %p453_p10 = scmp.lt.s32.totalorder %s280_s6, %s651_s4 }
  0x9e   : > { %p454_p11 = scmp.lt.s32.totalorder %s452_s14, %s448_s12 }
  0x9f   : > { %p450_p7 = pnand %p449_p6, %p579_p4 }
  0xa0   : > { %p455_p12 = por %p454_p11, %p453_p10 }
  0xa1   : > { %p451_p9 = pneg %p450_p7 }
  0xa3   : > { %p456_p13 = pnand %p455_p12, %p451_p9 }
  0xa5   : > { %459 = shalt.err (!%p456_p13)
}
  0xa6   : > { %377 = dma.vmem_to_hbm [thread:$0]  (%p579_p4), %s283_s29, 64, %s280_s6, %s268_s8  }
  0xa7 PF: > { %p383_p0 = scmp.ge.s32.totalorder %s510_s20, 2  ;;  %s294_s24 = sand.u32 1, %s490_s15  }
  0xa8   : > { %s295_s26 = scalar_lea.sflag [#allocation3], %s294_s24 }
  0xa9   : > { %p380_p1 = pnand %p383_p0, %p586_p8 }
  0xab   : > { %p381_p2 = pneg %p380_p1 }
  0xad   : > { %485 = dma.done.wait (%p381_p2), %s295_s26, 64  }
  0xae   : > { %487 = vsyncadd (%p381_p2), %s295_s26, 4294967232  ;;  %s17_s20 = sadd.s32 1, %s510_s20   ;;  %s654_s15 = smov %s494_s16 }
  0xaf   : > { %p14_p3 = scmp.ge.s32.totalorder %s17_s20, 4   ;;  %s655_s16 = smov %s498_s17 }
  0xb0   : > { %s656_s17 = smov %s592_s28  ;;  %s657_s18 = smov %s506_s19 }
  0xb1   : > { %s658_s19 = smov %s660_s23  ;;  %16 = sbr.rel (!%p14_p3) target bundleno = 4 (0x4), region = 74 }
  0xb6   :  { %300 = vsyncpa [#allocation3], 1 }
  0xb7   :  { %302 = vsyncpa [#allocation3 + $0x1], 1 }

</bundles_post_ra>
